<compile_context>
chip_gen: v7x
topology: tpu7x:2x2x1
jax: 0.10.0
libtpu: 0.0.40
codegen_flags: <defaults>
</compile_context>

<pallas_src>
import functools

import jax
import jax.numpy as jnp
import numpy as np
from jax.experimental import pallas as pl
from jax.experimental.pallas import tpu as pltpu

_LANE = 128
_SUBLANE = 8


# --------------------------- generation-aware config ---------------------------

def _tpu_setup():
    """VMEM budget + tile targets per TPU generation (v5e/v6e: 128 MiB, v7x: 64 MiB)."""
    vmem_cap = None
    try:
        vmem_cap = int(pltpu.get_tpu_info().vmem_capacity_bytes)
    except Exception:
        vmem_cap = None
    kind = ""
    try:
        kind = (jax.devices()[0].device_kind or "").lower()
    except Exception:
        pass
    num_tc = 2 if "v7" in kind else 1
    if vmem_cap is None:
        # Conservative fallback: assume the smallest (v7x-like) VMEM.
        vmem_cap = 64 * 1024 * 1024 if num_tc >= 2 else 128 * 1024 * 1024
    limit = max(32 * 1024 * 1024, min(int(vmem_cap * 3 // 4), 96 * 1024 * 1024))
    big = limit >= 64 * 1024 * 1024          # v5e / v6e
    targets = dict(
        tm=512 if big else 256,
        tn=512 if big else 256,
        tk=1024 if big else 512,
        ti=1024 if big else 256,
        att_tq=256 if big else 128,
        att_tk=512 if big else 256,
    )
    return limit, num_tc, targets


_VMEM_LIMIT, _NUM_TC, _TGT = _tpu_setup()
_VMEM_BUDGET = int(_VMEM_LIMIT * 0.85)   # headroom for compiler-internal scratch


# ------------------------------- tiling helpers --------------------------------

def _pick_block(dim, target, unit):
    """Largest multiple of `unit` <= target that evenly divides `dim`; else full dim."""
    if dim <= target:
        return dim
    t = min(target, dim)
    t -= t % unit
    while t >= unit:
        if dim % t == 0:
            return t
        t -= unit
    # TODO(synk): pad non-divisible real-model dims at init instead of falling back
    # to the full (untiled) dimension.
    return dim


def _pick_m_block(m, target, other_parallel=1):
    tm = _pick_block(m, target, _SUBLANE)
    # v7x has 2 TensorCores: split M only when the megacore would otherwise see
    # fewer than 2 parallel grid blocks.  v5e/v6e (single TC): never split.
    if (_NUM_TC >= 2 and other_parallel * (m // tm) < 2
            and tm == m and m % (2 * _SUBLANE) == 0):
        tm = m // 2
    return tm


def _vmem_estimate(blocks, scratch=()):
    """Double-buffered block tiles + single-buffered scratch, in bytes."""
    total = 0
    for shape, dtype in blocks:
        total += 2 * int(np.prod(shape)) * jnp.dtype(dtype).itemsize
    for shape, dtype in scratch:
        total += int(np.prod(shape)) * jnp.dtype(dtype).itemsize
    return total


def _fit_tiles(make):
    """make(shrink) -> (tiles, est_bytes); halve tile targets until under budget."""
    shrink = 1
    tiles, est = make(shrink)
    while est > _VMEM_BUDGET and shrink < 64:
        shrink *= 2
        tiles, est = make(shrink)
    return tiles


# ------------------------------- Pallas kernels --------------------------------

def _norm_matmul_kernel(x_ref, ln_ref, w_ref, o_ref, h_sc, *, eps):
    # out = GemmaRMSNorm(x; ln) @ W   with W already laid out (K, N).
    # Norm is hoisted: computed once per M block (j == 0) into VMEM scratch.
    @pl.when(pl.program_id(1) == 0)
    def _():
        x = x_ref[...].astype(jnp.float32)
        var = jnp.mean(x * x, axis=-1, keepdims=True)
        h_sc[...] = (x * jax.lax.rsqrt(var + eps)
                     * (1.0 + ln_ref[...].astype(jnp.float32))).astype(h_sc.dtype)

    o_ref[...] = jnp.dot(h_sc[...], w_ref[...],
                         preferred_element_type=jnp.float32).astype(o_ref.dtype)


def _matmul_kernel(x_ref, w_ref, o_ref, acc_ref):
    @pl.when(pl.program_id(2) == 0)
    def _():
        acc_ref[...] = jnp.zeros(acc_ref.shape, acc_ref.dtype)

    acc_ref[...] += jnp.dot(x_ref[...], w_ref[...],
                            preferred_element_type=jnp.float32)

    @pl.when(pl.program_id(2) == pl.num_programs(2) - 1)
    def _():
        o_ref[...] = acc_ref[...].astype(o_ref.dtype)


def _matmul_residual_kernel(x_ref, w_ref, r_ref, o_ref, acc_ref):
    @pl.when(pl.program_id(2) == 0)
    def _():
        acc_ref[...] = jnp.zeros(acc_ref.shape, acc_ref.dtype)

    acc_ref[...] += jnp.dot(x_ref[...], w_ref[...],
                            preferred_element_type=jnp.float32)

    @pl.when(pl.program_id(2) == pl.num_programs(2) - 1)
    def _():
        o_ref[...] = (r_ref[...].astype(jnp.float32)
                      + acc_ref[...]).astype(o_ref.dtype)


def _mlp_block_kernel(x_ref, a_ref, ln_ref, wg_ref, wu_ref, wd_ref, o_ref,
                      h_sc, acc_sc, *, eps):
    # out = h1 + down( gelu_tanh(h @ Wg) * (h @ Wu) )
    #   where h1 = x + attn_out  and  h = GemmaRMSNorm(h1; ln)
    # Tiled over the intermediate dim (grid axis 1, 'arbitrary').
    ii = pl.program_id(1)

    @pl.when(ii == 0)
    def _():
        h1 = x_ref[...].astype(jnp.float32) + a_ref[...].astype(jnp.float32)
        var = jnp.mean(h1 * h1, axis=-1, keepdims=True)
        h_sc[...] = (h1 * jax.lax.rsqrt(var + eps)
                     * (1.0 + ln_ref[...].astype(jnp.float32))).astype(h_sc.dtype)
        acc_sc[...] = jnp.zeros(acc_sc.shape, acc_sc.dtype)

    h = h_sc[...]
    gate = jnp.dot(h, wg_ref[...], preferred_element_type=jnp.float32)
    up = jnp.dot(h, wu_ref[...], preferred_element_type=jnp.float32)
    act = 0.5 * gate * (1.0 + jnp.tanh(
        0.7978845608028654 * (gate + 0.044715 * gate * gate * gate)))
    acc_sc[...] += jnp.dot((act * up).astype(wd_ref.dtype), wd_ref[...],
                           preferred_element_type=jnp.float32)

    @pl.when(ii == pl.num_programs(1) - 1)
    def _():
        h1 = x_ref[...].astype(jnp.float32) + a_ref[...].astype(jnp.float32)
        o_ref[...] = (h1 + acc_sc[...]).astype(o_ref.dtype)


def _flash_attn_kernel(q_ref, k_ref, v_ref, o_ref, m_sc, l_sc, acc_sc):
    # Online-softmax attention over one (batch, q-block); all heads at once.
    # Softmax scale is pre-folded into q (via the q projection weights).
    kv = pl.program_id(2)

    @pl.when(kv == 0)
    def _():
        m_sc[...] = jnp.full(m_sc.shape, -jnp.inf, m_sc.dtype)
        l_sc[...] = jnp.zeros(l_sc.shape, l_sc.dtype)
        acc_sc[...] = jnp.zeros(acc_sc.shape, acc_sc.dtype)

    s = jnp.einsum("hqd,hkd->hqk", q_ref[...], k_ref[...],
                   preferred_element_type=jnp.float32)
    m_prev = m_sc[...]
    m_new = jnp.maximum(m_prev, jnp.max(s, axis=-1, keepdims=True))
    alpha = jnp.exp(m_prev - m_new)
    p = jnp.exp(s - m_new)
    l_sc[...] = alpha * l_sc[...] + jnp.sum(p, axis=-1, keepdims=True)
    acc_sc[...] = alpha * acc_sc[...] + jnp.einsum(
        "hqk,hkd->hqd", p.astype(v_ref.dtype), v_ref[...],
        preferred_element_type=jnp.float32)
    m_sc[...] = m_new

    @pl.when(kv == pl.num_programs(2) - 1)
    def _():
        o_ref[...] = (acc_sc[...] * pl.reciprocal(l_sc[...], approx=True)
                      ).astype(o_ref.dtype)


# ------------------------------ Pallas wrappers --------------------------------

def pallas_norm_matmul(x, ln_w, w_t, eps=1e-6):
    """out = GemmaRMSNorm(x; ln_w) @ w_t.   x: (M, H) bf16, w_t: (H, N) bf16."""
    M, H = x.shape
    N = w_t.shape[1]

    def make(shrink):
        tn = _pick_block(N, max(_LANE, _TGT["tn"] // shrink), _LANE)
        tm = _pick_m_block(M, max(_SUBLANE, _TGT["tm"] // shrink), other_parallel=1)
        blocks = [((tm, H), x.dtype), ((1, H), ln_w.dtype), ((H, tn), w_t.dtype),
                  ((tm, tn), x.dtype)]
        return (tm, tn), _vmem_estimate(blocks, [((tm, H), x.dtype)])

    tm, tn = _fit_tiles(make)
    return pl.pallas_call(
        functools.partial(_norm_matmul_kernel, eps=eps),
        out_shape=jax.ShapeDtypeStruct((M, N), x.dtype),
        grid=(M // tm, N // tn),
        in_specs=[
            pl.BlockSpec((tm, H), lambda i, j: (i, 0)),
            pl.BlockSpec((1, H), lambda i, j: (0, 0)),
            pl.BlockSpec((H, tn), lambda i, j: (0, j)),
        ],
        out_specs=pl.BlockSpec((tm, tn), lambda i, j: (i, j)),
        scratch_shapes=[pltpu.VMEM((tm, H), x.dtype)],
        compiler_params=pltpu.CompilerParams(
            dimension_semantics=("parallel", "arbitrary"),
            vmem_limit_bytes=_VMEM_LIMIT),
    )(x, ln_w.reshape(1, H), w_t)


def pallas_matmul(x, w_t, residual=None):
    """out = x @ w_t (+ residual).   x: (M, K), w_t: (K, N), bf16 in / f32 acc."""
    M, K = x.shape
    N = w_t.shape[1]

    def make(shrink):
        tn = _pick_block(N, max(_LANE, _TGT["tn"] // shrink), _LANE)
        tm = _pick_m_block(M, max(_SUBLANE, _TGT["tm"] // shrink),
                           other_parallel=N // tn)
        tk = _pick_block(K, max(_LANE, _TGT["tk"] // shrink), _LANE)
        blocks = [((tm, tk), x.dtype), ((tk, tn), w_t.dtype), ((tm, tn), x.dtype)]
        if residual is not None:
            blocks.append(((tm, tn), residual.dtype))
        return (tm, tn, tk), _vmem_estimate(blocks, [((tm, tn), jnp.float32)])

    tm, tn, tk = _fit_tiles(make)
    in_specs = [
        pl.BlockSpec((tm, tk), lambda i, j, kk: (i, kk)),
        pl.BlockSpec((tk, tn), lambda i, j, kk: (kk, j)),
    ]
    if residual is None:
        kernel, args = _matmul_kernel, (x, w_t)
    else:
        kernel, args = _matmul_residual_kernel, (x, w_t, residual)
        in_specs.append(pl.BlockSpec((tm, tn), lambda i, j, kk: (i, j)))
    # TODO(synk): on v5e/v6e a 3-deep pipeline (pipeline_mode=pl.Buffered(3)) on the
    # streamed weight spec would hide DMA bubbles at tile boundaries.
    return pl.pallas_call(
        kernel,
        out_shape=jax.ShapeDtypeStruct((M, N), x.dtype),
        grid=(M // tm, N // tn, K // tk),
        in_specs=in_specs,
        out_specs=pl.BlockSpec((tm, tn), lambda i, j, kk: (i, j)),
        scratch_shapes=[pltpu.VMEM((tm, tn), jnp.float32)],
        compiler_params=pltpu.CompilerParams(
            dimension_semantics=("parallel", "parallel", "arbitrary"),
            vmem_limit_bytes=_VMEM_LIMIT),
    )(*args)


def pallas_mlp_block(x, attn_out, ln_w, wg_t, wu_t, wd_t, eps=1e-6):
    """Fused: (x + attn_out) + GemmaMLP(GemmaRMSNorm(x + attn_out; ln_w))."""
    M, H = x.shape
    I = wg_t.shape[1]

    def make(shrink):
        ti = _pick_block(I, max(_LANE, _TGT["ti"] // shrink), _LANE)
        tm = _pick_m_block(M, max(_SUBLANE, _TGT["tm"] // shrink), other_parallel=1)
        blocks = [((tm, H), x.dtype), ((tm, H), attn_out.dtype), ((1, H), ln_w.dtype),
                  ((H, ti), wg_t.dtype), ((H, ti), wu_t.dtype), ((ti, H), wd_t.dtype),
                  ((tm, H), x.dtype)]
        scratch = [((tm, H), x.dtype), ((tm, H), jnp.float32)]
        return (tm, ti), _vmem_estimate(blocks, scratch)

    tm, ti = _fit_tiles(make)
    return pl.pallas_call(
        functools.partial(_mlp_block_kernel, eps=eps),
        out_shape=jax.ShapeDtypeStruct((M, H), x.dtype),
        grid=(M // tm, I // ti),
        in_specs=[
            pl.BlockSpec((tm, H), lambda i, ii: (i, 0)),
            pl.BlockSpec((tm, H), lambda i, ii: (i, 0)),
            pl.BlockSpec((1, H), lambda i, ii: (0, 0)),
            pl.BlockSpec((H, ti), lambda i, ii: (0, ii)),
            pl.BlockSpec((H, ti), lambda i, ii: (0, ii)),
            pl.BlockSpec((ti, H), lambda i, ii: (ii, 0)),
        ],
        out_specs=pl.BlockSpec((tm, H), lambda i, ii: (i, 0)),
        scratch_shapes=[pltpu.VMEM((tm, H), x.dtype),
                        pltpu.VMEM((tm, H), jnp.float32)],
        compiler_params=pltpu.CompilerParams(
            dimension_semantics=("parallel", "arbitrary"),
            vmem_limit_bytes=_VMEM_LIMIT),
    )(x, attn_out, ln_w.reshape(1, H), wg_t, wu_t, wd_t)


def pallas_flash_attention(q, k, v):
    """softmax(q k^T) v (scale pre-folded into q), tiled over Sq and Sk.

    q/k/v: (B, nH, S, D) bf16.  No bias input: the default/test path passes None
    masks.  TODO(synk): additive attention masks / KV cache not implemented.
    """
    B, nH, Sq, D = q.shape
    Sk = k.shape[2]

    def make(shrink):
        tq = _pick_block(Sq, max(_SUBLANE, _TGT["att_tq"] // shrink), _SUBLANE)
        tk = _pick_block(Sk, max(_SUBLANE, _TGT["att_tk"] // shrink), _SUBLANE)
        blocks = [((nH, tq, D), q.dtype), ((nH, tk, D), k.dtype),
                  ((nH, tk, D), v.dtype), ((nH, tq, D), q.dtype)]
        scratch = [((nH, tq, _LANE), jnp.float32), ((nH, tq, _LANE), jnp.float32),
                   ((nH, tq, D), jnp.float32)]
        return (tq, tk), _vmem_estimate(blocks, scratch)

    tq, tk = _fit_tiles(make)
    return pl.pallas_call(
        _flash_attn_kernel,
        out_shape=jax.ShapeDtypeStruct((B, nH, Sq, D), q.dtype),
        grid=(B, Sq // tq, Sk // tk),
        in_specs=[
            pl.BlockSpec((None, nH, tq, D), lambda b, qi, ki: (b, 0, qi, 0)),
            pl.BlockSpec((None, nH, tk, D), lambda b, qi, ki: (b, 0, ki, 0)),
            pl.BlockSpec((None, nH, tk, D), lambda b, qi, ki: (b, 0, ki, 0)),
        ],
        out_specs=pl.BlockSpec((None, nH, tq, D), lambda b, qi, ki: (b, 0, qi, 0)),
        scratch_shapes=[
            pltpu.VMEM((nH, tq, 1), jnp.float32),
            pltpu.VMEM((nH, tq, 1), jnp.float32),
            pltpu.VMEM((nH, tq, D), jnp.float32),
        ],
        compiler_params=pltpu.CompilerParams(
            dimension_semantics=("parallel", "parallel", "arbitrary"),
            vmem_limit_bytes=_VMEM_LIMIT),
    )(q, k, v)


# ----------------------------- Pure-JAX reference ------------------------------

def _gelu_tanh(x):
    return 0.5 * x * (1.0 + jnp.tanh(0.7978845608028654 * (x + 0.044715 * x ** 3)))


def _ref_rmsnorm(x, w, eps=1e-6):
    xf = x.astype(jnp.float32)
    n = xf * jax.lax.rsqrt(jnp.mean(xf * xf, axis=-1, keepdims=True) + eps)
    return (n * (1.0 + w.astype(jnp.float32))).astype(x.dtype)


def ref_norm_matmul(x, ln_w, w_t, eps=1e-6):
    return _ref_rmsnorm(x, ln_w, eps) @ w_t


def ref_matmul(x, w_t, residual=None):
    y = x @ w_t
    return y if residual is None else residual + y


def ref_mlp_block(x, attn_out, ln_w, wg_t, wu_t, wd_t, eps=1e-6):
    h1 = x + attn_out
    h = _ref_rmsnorm(h1, ln_w, eps)
    return h1 + (_gelu_tanh(h @ wg_t) * (h @ wu_t)) @ wd_t


def ref_attention(q, k, v):
    s = jnp.einsum("bhqd,bhkd->bhqk", q, k)        # scale pre-folded into q
    p = jax.nn.softmax(s.astype(jnp.float32), axis=-1).astype(q.dtype)
    return jnp.einsum("bhqk,bhkd->bhqd", p, v)


# ----------------------------- Model glue (plain JAX) ---------------------------

def rotary_embedding(seq, dim, base=10000.0, dtype=jnp.float32):
    # GemmaRotaryEmbedding with default positions arange(seq); shape (S, D).
    inv_freq = 1.0 / (base ** (jnp.arange(0, dim, 2, dtype=jnp.float32) / dim))
    pos = jnp.arange(seq, dtype=jnp.float32)
    freqs = pos[:, None] * inv_freq[None, :]
    emb = jnp.concatenate([freqs, freqs], axis=-1)
    return jnp.cos(emb).astype(dtype), jnp.sin(emb).astype(dtype)


def _rotate_half(x):
    half = x.shape[-1] // 2
    return jnp.concatenate([-x[..., half:], x[..., :half]], axis=-1)


def apply_rope(q, k, cos, sin):
    # q/k: (B, nH, S, D); cos/sin: (S, D).
    # TODO(synk): fuse into the attention kernel prologue with pltpu.roll.
    cos = cos[None, None]
    sin = sin[None, None]
    return q * cos + _rotate_half(q) * sin, k * cos + _rotate_half(k) * sin


def expert_forward(p, x, cos, sin, ops):
    """GemmaDecoderLayer forward; returns output and PRE-RoPE (q, k, v) states
    (CustomGemmaAttention stores q/k/v before apply_rotary_pos_emb)."""
    B, S, H = x.shape
    nH, D = p["num_heads"], p["head_dim"]
    x2 = x.reshape(B * S, H)

    # Fused: input RMSNorm + single stacked QKV projection (one pallas_call).
    qkv = ops["norm_matmul"](x2, p["input_ln"], p["qkv_proj_t"])   # (M, 3*nH*D)
    qkv = qkv.reshape(B, S, 3, nH, D)
    # TODO(synk): these head transposes are HBM-materialized XLA copies; fold into
    # the attention kernel layout at real Gemma shapes.
    q = qkv[:, :, 0].transpose(0, 2, 1, 3)                          # (B, nH, S, D)
    k = qkv[:, :, 1].transpose(0, 2, 1, 3)
    v = qkv[:, :, 2].transpose(0, 2, 1, 3)
    q_pre, k_pre, v_pre = q, k, v   # exposed (pre-RoPE) states for mix-attention

    qr, kr = apply_rope(q, k, cos, sin)
    attn = ops["attention"](qr, kr, v)                              # (B, nH, S, D)
    attn2 = attn.transpose(0, 2, 1, 3).reshape(B * S, nH * D)
    attn_proj = ops["matmul"](attn2, p["o_proj_t"])                 # (M, H)

    # Fused: residual add + post-attention RMSNorm + gated-GELU MLP + residual.
    out = ops["mlp_block"](x2, attn_proj, p["post_ln"],
                           p["gate_proj_t"], p["up_proj_t"], p["down_proj_t"])
    return out.reshape(B, S, H), (q_pre, k_pre, v_pre)


def moe_forward(params, hidden_states, ops):
    expert_outputs, qs, ks, vs = {}, [], [], []
    for name, x in hidden_states.items():
        p = params[name]
        _, S, _ = x.shape
        cos, sin = rotary_embedding(S, p["head_dim"], dtype=x.dtype)
        out, (q, k, v) = expert_forward(p, x, cos, sin, ops)
        expert_outputs[name] = out
        qs.append(q); ks.append(k); vs.append(v)

    Q = jnp.concatenate(qs, axis=2)
    K = jnp.concatenate(ks, axis=2)
    V = jnp.concatenate(vs, axis=2)
    B, nH, tot_S, D = Q.shape
    mixed = ops["attention"](Q, K, V)                 # mix_attention_mask=None
    mixed2 = mixed.transpose(0, 2, 1, 3).reshape(B, tot_S, nH * D)

    outputs, off = {}, 0
    for name, x in hidden_states.items():
        S = x.shape[1]
        chunk = mixed2[:, off:off + S].reshape(B * S, nH * D)
        eo = expert_outputs[name]
        # o_proj of the mixed output with the final residual add fused in.
        out = ops["matmul"](chunk, params[name]["o_proj_t"],
                            residual=eo.reshape(B * S, -1))
        outputs[name] = out.reshape(B, S, -1)
        off += S
    return outputs


# ------------------------------- Parameter init --------------------------------

def init_expert_params(key, hidden, intermediate, num_heads, num_kv_heads, head_dim,
                       scale=0.02, dtype=jnp.bfloat16):
    assert num_kv_heads == num_heads  # TODO(synk): GQA repeat_kv not implemented.
    ks = jax.random.split(key, 9)

    def w(k, shape):
        return scale * jax.random.normal(k, shape, dtype=jnp.float32)

    nqd = num_heads * head_dim
    # Fold the softmax scale (head_dim**-0.5) into the q projection once at init:
    # both the expert attention and the mixed attention use the same scale on q.
    q_w = w(ks[0], (nqd, hidden)) * (head_dim ** -0.5)
    k_w = w(ks[1], (num_kv_heads * head_dim, hidden))
    v_w = w(ks[2], (num_kv_heads * head_dim, hidden))
    # One-time layout prep: pre-transpose every weight to (in, out), stack Q/K/V
    # column-wise, and store everything in bf16 (fp32 only in MXU accumulators).
    return {
        "num_heads": num_heads,
        "head_dim": head_dim,
        "qkv_proj_t": jnp.concatenate([q_w.T, k_w.T, v_w.T], axis=1).astype(dtype),
        "o_proj_t": w(ks[3], (hidden, nqd)).T.astype(dtype),
        "gate_proj_t": w(ks[4], (intermediate, hidden)).T.astype(dtype),
        "up_proj_t": w(ks[5], (intermediate, hidden)).T.astype(dtype),
        "down_proj_t": w(ks[6], (hidden, intermediate)).T.astype(dtype),
        "input_ln": w(ks[7], (hidden,)).astype(dtype),
        "post_ln": w(ks[8], (hidden,)).astype(dtype),
    }


def _to_f32(tree):
    def cast(a):
        if isinstance(a, jnp.ndarray) and jnp.issubdtype(a.dtype, jnp.floating):
            return a.astype(jnp.float32)
        return a
    return jax.tree_util.tree_map(cast, tree)


# ------------------------------------ Main --------------------------------------

if __name__ == "__main__":
    key = jax.random.PRNGKey(0)
    B = 2
    num_heads, head_dim = 4, 16
    dtype = jnp.bfloat16
    # Two experts with different seq lengths / hidden sizes, same heads/head_dim
    # (required for the cross-expert concat along the sequence axis).
    expert_cfg = {
        "vlm": dict(hidden=32, intermediate=64, seq=8),
        "action": dict(hidden=48, intermediate=96, seq=4),
    }

    kp, kx = jax.random.split(key)
    pkeys = jax.random.split(kp, len(expert_cfg))
    xkeys = jax.random.split(kx, len(expert_cfg))

    params, hidden_states = {}, {}
    for i, (name, cfg) in enumerate(expert_cfg.items()):
        params[name] = init_expert_params(
            pkeys[i], cfg["hidden"], cfg["intermediate"],
            num_heads, num_heads, head_dim, dtype=dtype)
        hidden_states[name] = jax.random.normal(
            xkeys[i], (B, cfg["seq"], cfg["hidden"]), dtype=jnp.float32).astype(dtype)

    pallas_ops = dict(norm_matmul=pallas_norm_matmul, matmul=pallas_matmul,
                      mlp_block=pallas_mlp_block, attention=pallas_flash_attention)
    ref_ops = dict(norm_matmul=ref_norm_matmul, matmul=ref_matmul,
                   mlp_block=ref_mlp_block, attention=ref_attention)

    out = moe_forward(params, hidden_states, pallas_ops)
    out = jax.tree_util.tree_map(jax.block_until_ready, out)

    # fp32 pure-JAX reference on the same bf16-rounded inputs/weights.
    ref = moe_forward(_to_f32(params), _to_f32(hidden_states), ref_ops)
    for name in out:
        np.testing.assert_allclose(
            np.asarray(out[name].astype(jnp.float32)), np.asarray(ref[name]),
            rtol=3e-2, atol=3e-2)

    print("KERNEL_OK")
</pallas_src>

<mosaic_0001>
module attributes {stable_mosaic.version = 11 : i64} {
  func.func @_norm_matmul_kernel(%arg0: i32, %arg1: i32, %arg2: memref<16x32xbf16, #tpu.memory_space<vmem>>, %arg3: memref<1x32xbf16, #tpu.memory_space<vmem>>, %arg4: memref<32x192xbf16, #tpu.memory_space<vmem>>, %arg5: memref<16x192xbf16, #tpu.memory_space<vmem>>, %arg6: memref<16x32xbf16, #tpu.memory_space<vmem>>) attributes {dimension_semantics = [#tpu.dimension_semantics<parallel>, #tpu.dimension_semantics<arbitrary>], iteration_bounds = array<i64: 1, 1>, scalar_prefetch = 0 : i64, scratch_operands = 1 : i64, tpu.core_type = #tpu.core_type<tc>, window_params = [{transform_indices = @transform_0, window_bounds = array<i64: 16, 32>}, {pipeline_mode = #tpu.pipeline_mode<synchronous>, transform_indices = @transform_1, window_bounds = array<i64: 1, 32>}, {transform_indices = @transform_2, window_bounds = array<i64: 32, 192>}, {transform_indices = @transform_3, window_bounds = array<i64: 16, 192>}]} {
    %c0_i32 = arith.constant 0 : i32
    %0 = arith.cmpi eq, %arg1, %c0_i32 : i32
    %1 = arith.extui %0 : i1 to i32
    %c0_i32_0 = arith.constant 0 : i32
    %2 = arith.cmpi ne, %1, %c0_i32_0 : i32
    scf.if %2 {
      %c0_6 = arith.constant 0 : index
      %c0_7 = arith.constant 0 : index
      %8 = vector.load %arg2[%c0_6, %c0_7] : memref<16x32xbf16, #tpu.memory_space<vmem>>, vector<16x32xbf16>
      %9 = arith.extf %8 : vector<16x32xbf16> to vector<16x32xf32>
      %10 = arith.mulf %9, %9 : vector<16x32xf32>
      %cst_8 = arith.constant dense<0.000000e+00> : vector<16xf32>
      %11 = vector.multi_reduction <add>, %10, %cst_8 [1] : vector<16x32xf32> to vector<16xf32>
      %12 = vector.shape_cast %11 : vector<16xf32> to vector<16x1xf32>
      %cst_9 = arith.constant 3.200000e+01 : f32
      %13 = vector.broadcast %cst_9 : f32 to vector<16x1xf32>
      %14 = arith.divf %12, %13 : vector<16x1xf32>
      %cst_10 = arith.constant 9.99999997E-7 : f32
      %15 = vector.broadcast %cst_10 : f32 to vector<16x1xf32>
      %16 = arith.addf %14, %15 : vector<16x1xf32>
      %17 = math.rsqrt %16 : vector<16x1xf32>
      %18 = vector.broadcast %17 : vector<16x1xf32> to vector<16x32xf32>
      %19 = arith.mulf %9, %18 : vector<16x32xf32>
      %c0_11 = arith.constant 0 : index
      %c0_12 = arith.constant 0 : index
      %20 = vector.load %arg3[%c0_11, %c0_12] : memref<1x32xbf16, #tpu.memory_space<vmem>>, vector<1x32xbf16>
      %21 = arith.extf %20 : vector<1x32xbf16> to vector<1x32xf32>
      %cst_13 = arith.constant 1.000000e+00 : f32
      %22 = vector.broadcast %cst_13 : f32 to vector<1x32xf32>
      %23 = arith.addf %22, %21 : vector<1x32xf32>
      %24 = vector.broadcast %23 : vector<1x32xf32> to vector<16x32xf32>
      %25 = arith.mulf %19, %24 : vector<16x32xf32>
      %26 = arith.truncf %25 : vector<16x32xf32> to vector<16x32xbf16>
      %c0_14 = arith.constant 0 : index
      %c0_15 = arith.constant 0 : index
      %27 = vector.load %arg6[%c0_14, %c0_15] : memref<16x32xbf16, #tpu.memory_space<vmem>>, vector<16x32xbf16>
      tpu.vector_store %arg6[%c0_14, %c0_15], %26 {strides = array<i32>} : memref<16x32xbf16, #tpu.memory_space<vmem>>, vector<16x32xbf16>,
    } else {
    }
    %c0 = arith.constant 0 : index
    %c0_1 = arith.constant 0 : index
    %3 = vector.load %arg6[%c0, %c0_1] : memref<16x32xbf16, #tpu.memory_space<vmem>>, vector<16x32xbf16>
    %c0_2 = arith.constant 0 : index
    %c0_3 = arith.constant 0 : index
    %4 = vector.load %arg4[%c0_2, %c0_3] : memref<32x192xbf16, #tpu.memory_space<vmem>>, vector<32x192xbf16>
    %cst = arith.constant dense<0.000000e+00> : vector<16x192xf32>
    %5 = tpu.matmul %3, %4, %cst {dimension_numbers = #tpu.dot_dimension_numbers<[1], [0], [0], [1], [0, 0, 1, 1], [], []>} : vector<16x32xbf16>, vector<32x192xbf16>, vector<16x192xf32> -> vector<16x192xf32>
    %6 = arith.truncf %5 : vector<16x192xf32> to vector<16x192xbf16>
    %c0_4 = arith.constant 0 : index
    %c0_5 = arith.constant 0 : index
    %7 = vector.load %arg5[%c0_4, %c0_5] : memref<16x192xbf16, #tpu.memory_space<vmem>>, vector<16x192xbf16>
    tpu.vector_store %arg5[%c0_4, %c0_5], %6 {strides = array<i32>} : memref<16x192xbf16, #tpu.memory_space<vmem>>, vector<16x192xbf16>,
    return
  }
  func.func @transform_0(%arg0: i32, %arg1: i32) -> (i32, i32) {
    %c0_i32 = arith.constant 0 : i32
    %c0_i32_0 = arith.constant 0 : i32
    return %arg0, %c0_i32 : i32, i32
  }
  func.func @transform_1(%arg0: i32, %arg1: i32) -> (i32, i32) {
    %c0_i32 = arith.constant 0 : i32
    %c0_i32_0 = arith.constant 0 : i32
    %c0_i32_1 = arith.constant 0 : i32
    return %c0_i32, %c0_i32_0 : i32, i32
  }
  func.func @transform_2(%arg0: i32, %arg1: i32) -> (i32, i32) {
    %c0_i32 = arith.constant 0 : i32
    %c0_i32_0 = arith.constant 0 : i32
    return %c0_i32, %arg1 : i32, i32
  }
  func.func @transform_3(%arg0: i32, %arg1: i32) -> (i32, i32) {
    %c0_i32 = arith.constant 0 : i32
    return %arg0, %arg1 : i32, i32
  }
}

</mosaic_0001>

<bundles_post_ra>
// kernel: tpu_custom_call.1
= control target key start
LH: loop header
LB: loop body
LE: loop exit
PB: predicated region body
PF: predicated region fallthrough
CT: control target
= control target key end

     0   :  { %8 = vsyncpa [#allocation4], 0  ;;  %s419_s0 = inlined_call_operand.hbm [shape: bf16[16,32], index: 0, kind: input, shape index: {}]   ;;  %s420_s1 = inlined_call_operand.hbm [shape: bf16[1,32], index: 1, kind: input, shape index: {}]   ;;  %s421_s2 = inlined_call_operand.hbm [shape: bf16[32,192], index: 2, kind: input, shape index: {}]   ;;  %s422_s3 = inlined_call_operand.hbm [shape: bf16[16,192], index: 3, kind: output, shape index: {}]  }
   0x1   :  { %9 = vsyncpa [#allocation7], 0 }
   0x2   :  { %10 = vsyncpa [#allocation5], 0  ;;  %s325_s12 = smov [#allocation6]   ;;  %s326_s14 = smov [#allocation3]  }
   0x3   :  { %s29_s13 = sshll.u32 %s325_s12, 4  ;;  %s16_s15 = sshll.u32 %s326_s14, 4  ;;  %s30_s13 = int_to_ptr.vmem [resolvable:$true] %s29_s13  ;;  %s354_s15 = int_to_ptr.vmem [resolvable:$true] %s16_s15 }
   0x4   :  { %s231_s18 = scalar_lea.hbm %s420_s1, 16 }
   0x5   :  { %p232_p0 = scmp.ne.s32.totalorder %s420_s1, %s231_s18  ;;  %p235_p1 = scmp.lt.u32.totalorder %s231_s18, %s420_s1 }
   0x7   :  { %p237_p2 = pnand %p235_p1, %p232_p0 }
   0x9   :  { %240 = shalt.err (!%p237_p2)
}
   0xa   :  { %s241_s23 = scalar_lea.vmem %s30_s13, 16  ;;  %s245_s24 = scalar_lea.vmem %s30_s13, 32 }
   0xb   :  { %p242_p3 = scmp.ne.s32.totalorder %s30_s13, %s241_s23  ;;  %p246_p4 = scmp.lt.s32.totalorder %s30_s13, %s30_s13 }
   0xc   :  { %p247_p5 = scmp.lt.s32.totalorder %s245_s24, %s241_s23 }
   0xe   :  { %p248_p6 = por %p247_p5, %p246_p4 }
  0x10   :  { %p249_p7 = pnand %p248_p6, %p242_p3 }
  0x12   :  { %252 = shalt.err (!%p249_p7)
}
  0x13   :  { %32 = dma.hbm_to_vmem [thread:$0]  %s420_s1, 16, %s30_s13, [#allocation7]  }
  0x14   :  { %s253_s29 = scalar_lea.hbm %s419_s0, 128 }
  0x15   :  { %p254_p8 = scmp.ne.s32.totalorder %s419_s0, %s253_s29  ;;  %p257_p9 = scmp.lt.u32.totalorder %s253_s29, %s419_s0 }
  0x17   :  { %p259_p10 = pnand %p257_p9, %p254_p8 }
  0x19   :  { %262 = shalt.err (!%p259_p10)
}
  0x1a   :  { %s263_s7 = scalar_lea.vmem %s354_s15, 128  ;;  %p268_p12 = scmp.lt.s32.totalorder %s354_s15, %s354_s15 }
  0x1b   :  { %p264_p11 = scmp.ne.s32.totalorder %s354_s15, %s263_s7  ;;  %p269_p13 = scmp.lt.s32.totalorder %s263_s7, %s263_s7 }
  0x1d   :  { %p270_p0 = por %p269_p13, %p268_p12 }
  0x1f   :  { %p271_p1 = pnand %p270_p0, %p264_p11 }
  0x21   :  { %274 = shalt.err (!%p271_p1)
}
  0x22   :  { %s327_s1 = smov 64   ;;  %s328_s8 = smov 4  }
  0x23   :  { %22 = dma.hbm_to_vmem [thread:$0]  %s419_s0, 128, %s354_s15, [#allocation4], %s327_s1, %s327_s1, %s328_s8  }
  0x24   :  { %s329_s11 = smov [#allocation8]   ;;  %s275_s16 = scalar_lea.hbm %s421_s2, 512 }
  0x25   :  { %s38_s12 = sshll.u32 %s329_s11, 4  ;;  %p276_p2 = scmp.ne.s32.totalorder %s421_s2, %s275_s16  ;;  %s39_s12 = int_to_ptr.vmem [resolvable:$true] %s38_s12 }
  0x26   :  { %p279_p3 = scmp.lt.u32.totalorder %s275_s16, %s421_s2 }
  0x28   :  { %p281_p4 = pnand %p279_p3, %p276_p2 }
  0x2a   :  { %284 = shalt.err (!%p281_p4)
}
  0x2b   :  { %s285_s21 = scalar_lea.vmem %s39_s12, 512  ;;  %p290_p6 = scmp.lt.s32.totalorder %s39_s12, %s39_s12 }
  0x2c   :  { %p286_p5 = scmp.ne.s32.totalorder %s39_s12, %s285_s21  ;;  %p291_p7 = scmp.lt.s32.totalorder %s285_s21, %s285_s21 }
  0x2e   :  { %p292_p8 = por %p291_p7, %p290_p6 }
  0x30   :  { %p293_p9 = pnand %p292_p8, %p286_p5 }
  0x32   :  { %296 = shalt.err (!%p293_p9)
}
  0x33   :  { %s330_s0 = smov 128   ;;  %s331_s15 = smov 8  }
  0x34   :  { %44 = dma.hbm_to_vmem [thread:$0]  %s421_s2, 512, %s39_s12, [#allocation7], %s330_s0, %s330_s0, %s331_s15  }
  0x35   :  { %319 = dma.done.wait [#allocation4], 128  }
  0x36   :  { %320 = vsyncadd [#allocation4], 4294967168 }
  0x37   :  { %321 = dma.done.wait [#allocation7], 528  }
  0x38   :  { %322 = vsyncadd [#allocation7], 4294966768  ;;  %v209_v0 = vld [vmem:[#allocation3] sm:$0xff]   ;;  %vm65_vm0 = vcmask 261120   ;;  %v221_v7 = vld [vmem:[#allocation8 + $0x4] ss:$8 sps:$4 sm:$0xff]   ;;  %v84_v17 = vlaneseq }
  0x39   :  { %v210_v1 = vunpack.c.l.bf16 %v209_v0  ;;  %v211_v2 = vunpack.c.h.bf16 %v209_v0  ;;  %v223_v8 = vld [vmem:[#allocation8] ss:$8 sps:$4 sm:$0xff]   ;;  %121 = vmatprep.subr.bf16.mxu0 %v221_v7  ;;  %v224_v9 = vld [vmem:[#allocation8 + $0x14] ss:$8 sps:$4 sm:$0xff]   ;;  %v226_v10 = vld [vmem:[#allocation8 + $0x10] ss:$8 sps:$4 sm:$0xff]  }
  0x3a   :  { %122 = vmatpush1.bf16.msra.mxu0 %v223_v8  ;;  %v332_v11 = vmov 0   ;;  %v81_v18 = vld [vmem:[#allocation6] sm:$0x1]  ;;  %v85_v21 = vshrl.u32 %v84_v17, 7  ;;  %vm176_vm1 = vcmask 1043456   ;;  %vm177_vm2 = vcmask 523268  }
  0x3b   :  { %v63_v3 = vmul.f32 %v210_v1, %v210_v1  ;;  %v64_v4 = vmul.f32 %v211_v2, %v211_v2  ;;  %153 = vmatprep.mubr.bf16.mxu0 %v332_v11  ;;  %123 = vmatprep.subr.bf16.mxu0 %v224_v9  ;;  %v82_v20 = vunpack.c.l.bf16 %v81_v18  ;;  %vm178_vm3 = vmor %vm177_vm2, %vm176_vm1  ;;  %s333_s2 = smov [#allocation9]  }
  0x3c   :  { %v86_v23 = vsub.s32 0, %v85_v21  ;;  %s186_s24 = sshll.u32 %s333_s2, 4  ;;  %s187_s24 = int_to_ptr.vmem [resolvable:$true] %s186_s24 }
  0x3d   :  { %v66_v5 = vsel %vm65_vm0, %v63_v3, 0.0  ;;  %v69_v6 = vsel %vm65_vm0, %v64_v4, 0.0  ;;  %v83_v22 = vadd.f32 1.0, %v82_v20  ;;  %s297_s25 = scalar_lea.vmem %s187_s24, 256  ;;  %p302_p11 = scmp.lt.s32.totalorder %s187_s24, %s187_s24 }
  0x3e   :  { %67 = vadd.xlane.f32.xlu0 %v66_v5  ;;  %124 = vmatpush1.bf16.msra.mxu0 %v226_v10  ;;  %p298_p10 = scmp.ne.s32.totalorder %s187_s24, %s297_s25  ;;  %p303_p12 = scmp.lt.s32.totalorder %s297_s25, %s297_s25 }
  0x3f   :  { %v87_v25 = vrot.slane %v83_v22, %v86_v23 }
  0x40   :  { %p304_p13 = por %p303_p12, %p302_p11 }
  0x42   :  { %70 = vadd.xlane.f32.xlu0 %v69_v6  ;;  %p305_p0 = pnand %p304_p13, %p298_p10 }
  0xcb   :  { %v68_v12 = vpop.xlane.xlu0 %67 }
  0xcc   :  { %v73_v13 = vmul.f32 0.03125, %v68_v12 }
  0xce   :  { %v75_v14 = vadd.f32 1e-06, %v73_v13 }
  0xcf   :  { %v71_v15 = vpop.xlane.xlu0 %70 }
  0xd0   :  { %227 = vrsqrt.f32 %v75_v14  ;;  %v74_v16 = vmul.f32 0.03125, %v71_v15 }
  0xd2   :  { %v76_v19 = vadd.f32 1e-06, %v74_v16 }
  0xd4   :  { %229 = vrsqrt.f32 %v76_v19 }
  0xda   :  { %v228_v24 = vpop.eup %227 }
  0xdb   :  { %v79_v26 = vmul.f32 %v228_v24, %v210_v1 }
  0xdd   :  { %v88_v29 = vmul.f32 %v87_v25, %v79_v26 }
  0xde   :  { %v230_v27 = vpop.eup %229 }
  0xdf   :  { %v80_v28 = vmul.f32 %v230_v27, %v211_v2 }
  0xe1   :  { %v89_v30 = vmul.f32 %v87_v25, %v80_v28 }
  0xe3   :  { %v90_v31 = vpack.c.bf16 %v89_v30, %v88_v29 }
  0xe5   :  { %91 = vst.msk [vmem:[#allocation2] sm:$0xff] %vm65_vm0, %v90_v31 }
  0xec   :  { %v92_v32 = vld [vmem:[#allocation2] sm:$0xff] }
  0xed   :  { %203 = vmatmul.mubr.msk.bf16.vlgmr.msra.gmra.mrb[0].mxu0 %vm65_vm0, %v92_v32 }
 0x1c0   :  { %v155_v33 = vpop.f32.mrb[0].mxu0 }
 0x1c1   :  { %v157_v34 = vpop.f32.mrb[1].mxu0 }
 0x1c2   :  { %v206_v35 = vpack.c.bf16 %v157_v34, %v155_v33  ;;  %v159_v36 = vpop.f32.mrb[2].mxu0 }
 0x1c3   :  { %v161_v37 = vpop.f32.mrb[3].mxu0 }
 0x1c4   :  { %v207_v38 = vpack.c.bf16 %v161_v37, %v159_v36  ;;  %179 = vst.msk [vmem:[#allocation9] sm:$0xff] %vm178_vm3, %v206_v35 }
 0x1c6   :  { %180 = vst.msk [vmem:[#allocation9 + $0x8] sm:$0xff] %vm178_vm3, %v207_v38 }
 0x1c7   :  { %308 = shalt.err (!%p305_p0)
}
 0x1c8   :  { %s309_s28 = scalar_lea.hbm %s422_s3, 256 }
 0x1c9   :  { %p310_p1 = scmp.ne.s32.totalorder %s422_s3, %s309_s28  ;;  %p313_p2 = scmp.lt.u32.totalorder %s309_s28, %s422_s3 }
 0x1cb   :  { %p315_p3 = pnand %p313_p2, %p310_p1 }
 0x1cd   :  { %318 = shalt.err (!%p315_p3)
}
 0x1ce   :  { %192 = dma.vmem_to_hbm [thread:$0]  %s187_s24, 256, %s422_s3, [#allocation5], %s330_s0, %s330_s0, %s331_s15  }
 0x1cf   :  { %323 = dma.done.wait [#allocation5], 256  }
 0x1d0   :  { %324 = vsyncadd [#allocation5], 4294967040 }
 0x1d1   :  { %196 = vsyncpa [#allocation4], 1 }
 0x1d2   :  { %197 = vsyncpa [#allocation7], 1 }
 0x1d3   :  { %198 = vsyncpa [#allocation5], 1 }

</bundles_post_ra>
